<compile_context>
chip_gen: v6e
topology: v6e:2x2x1
jax: 0.10.0
libtpu: 0.0.40
codegen_flags: <defaults>
</compile_context>

<pallas_src>
import math
from functools import partial

import jax
import jax.numpy as jnp
from jax.experimental import pallas as pl
from jax.experimental.pallas import tpu as pltpu

POS_DIM = 50
ATTN_TYPE = "kv"


# ----------------------------------------------------------------------------
# PositionalEncoding2D (the global `pos_embeddings` buffer), plain JAX glue.
# ----------------------------------------------------------------------------
def positional_encoding_2d(channels, x, y):
    ch = int(math.ceil(channels / 4) * 2)
    inv_freq = 1.0 / (10000.0 ** (jnp.arange(0, ch, 2, dtype=jnp.float32) / ch))
    pos_x = jnp.arange(x, dtype=jnp.float32)
    pos_y = jnp.arange(y, dtype=jnp.float32)
    sin_inp_x = pos_x[:, None] * inv_freq[None, :]          # (x, ch//2)
    sin_inp_y = pos_y[:, None] * inv_freq[None, :]          # (y, ch//2)

    def get_emb(s):  # interleaved sin/cos, matches the reference impl
        return jnp.stack([jnp.sin(s), jnp.cos(s)], axis=-1).reshape(s.shape[0], -1)

    emb_x = get_emb(sin_inp_x)[:, None, :]                  # (x, 1, ch)
    emb_y = get_emb(sin_inp_y)[None, :, :]                  # (1, y, ch)
    emb = jnp.zeros((x, y, 2 * ch), dtype=jnp.float32)
    emb = emb.at[:, :, :ch].set(jnp.broadcast_to(emb_x, (x, y, ch)))
    emb = emb.at[:, :, ch:2 * ch].set(jnp.broadcast_to(emb_y, (x, y, ch)))
    return emb[None, :, :, :channels]                       # (1, x, y, channels)


# ----------------------------------------------------------------------------
# Pallas kernel: one batch tile (Bt elements) per grid step; heads fused.
# ----------------------------------------------------------------------------
def attention_kv_kernel(x_ref, wkv_ref, posb_ref, coef_ref, wout_ref, bout_ref,
                        o_ref, kv_ref, outbuf_ref, *, heads, bt):
    n = x_ref.shape[1]
    dim = x_ref.shape[2]
    dh = dim // heads

    # Fused K/V projection over all Bt*n rows: one bf16 MXU matmul, f32 acc,
    # result staged in bf16 VMEM scratch (single cast, halved scratch).
    x_flat = x_ref[...].reshape(bt * n, dim).astype(jnp.bfloat16)       # (Bt*n, dim)
    kv = jnp.dot(x_flat, wkv_ref[...], preferred_element_type=jnp.float32)
    kv_ref[...] = kv.reshape(bt, n, 2 * dim).astype(jnp.bfloat16)

    coef = coef_ref[0]            # scale * sum(w_pos)   (f32 scalar in SMEM)

    for bi in range(bt):
        kv_b = kv_ref[bi]                                   # (n, 2*dim) bf16
        head_outs = []
        # NOTE: dh-wide lane slices below are sub-128-lane at small dh; at
        # production sizes pick heads/dh so slices are 128-lane multiples.
        for h in range(heads):
            k = kv_b[:, h * dh:(h + 1) * dh]                # (n, dh) bf16
            v = kv_b[:, dim + h * dh:dim + (h + 1) * dh]    # (n, dh) bf16

            # coef folded into k:  coef*(k @ k^T) == (coef*k) @ k^T
            k_scaled = (k.astype(jnp.float32) * coef).astype(jnp.bfloat16)
            dots = jax.lax.dot_general(k_scaled, k, (((1,), (1,)), ((), ())),
                                       preferred_element_type=jnp.float32)  # (n,n)

            # logits = dots + (pos @ w_pos + b_pos); bias read from VMEM here
            logits = dots + posb_ref[...].astype(jnp.float32)

            # softmax with deferred normalization (reciprocal applied on (n,dh))
            m = jnp.max(logits, axis=-1, keepdims=True)
            e = jnp.exp(logits - m)
            s = jnp.sum(e, axis=-1, keepdims=True)
            out_h = jnp.dot(e.astype(jnp.bfloat16), v,
                            preferred_element_type=jnp.float32)          # (n, dh)
            out_h = out_h * pl.reciprocal(s, approx=True)
            head_outs.append(out_h)

        # One lane-dense (n, dim) store per batch element (no masked stores).
        outbuf_ref[bi] = jnp.concatenate(head_outs, axis=-1).astype(jnp.bfloat16)

    # Fused to_out projection over all Bt*n rows.
    o = jnp.dot(outbuf_ref[...].reshape(bt * n, dim), wout_ref[...],
                preferred_element_type=jnp.float32) + bout_ref[...]
    o_ref[...] = o.reshape(bt, n, dim).astype(o_ref.dtype)


def attention_kv(x, W_kv, W_out, b_out, w_pos, b_pos, pos, *, heads):
    """x: (b, n, dim) f32.  W_kv: (2*dim, dim).  W_out: (dim, dim).  b_out: (dim,).
    w_pos: (1, POS_DIM).  b_pos: (1,).  pos: (n, n, POS_DIM)."""
    b, n, dim = x.shape
    assert dim % heads == 0, "dim must be divisible by heads"
    scale = dim ** (-0.5)

    # Algebraic rewrite of map_pos applied to (dots[...,None] + pos):
    #   sum_p((dots + pos_p) * w_p) + b  ==  dots * sum(w) + pos @ w + b
    coef = (jnp.sum(w_pos) * scale).reshape(1).astype(jnp.float32)            # (1,)
    pos_bias = (jnp.einsum('ijp,p->ij', pos, w_pos[0])
                + b_pos[0]).astype(jnp.bfloat16)                              # (n,n) bf16

    # Weights pre-cast to bf16 (halves DMA, feeds MXU at bf16 rate).
    wkv_t = W_kv.T.astype(jnp.bfloat16)     # (dim, 2*dim): cols = [K heads | V heads]
    wout_t = W_out.T.astype(jnp.bfloat16)   # (dim, dim)
    b_out2 = b_out.reshape(1, dim).astype(jnp.float32)

    # Batch tile: amortize per-grid-step overhead (aim Bt*n >= 256 MXU rows)
    # but keep >= 2 grid steps when b >= 2 so the megacore has parallel work.
    bt = max(1, min(-(-256 // n), b))
    if b >= 2:
        bt = max(1, min(bt, b // 2))
    while b % bt:
        bt -= 1
    grid_b = b // bt

    # Explicit VMEM budget (double-buffered in/out tiles + scratch + weights),
    # clamped well under v7x's 64 MiB physical VMEM.
    tile_bytes = (bt * n * dim * 4) * 2                      # x + out tiles (f32)
    const_bytes = (dim * 2 * dim + dim * dim) * 2 + n * n * 2 + dim * 4
    scratch_bytes = bt * n * (2 * dim + dim) * 2             # bf16 kv + outbuf
    vmem_need = 2 * (tile_bytes + const_bytes) + scratch_bytes
    vmem_limit = int(min(max(4 * vmem_need, 16 << 20), 48 << 20))

    kernel = partial(attention_kv_kernel, heads=heads, bt=bt)

    return pl.pallas_call(
        kernel,
        out_shape=jax.ShapeDtypeStruct((b, n, dim), jnp.float32),
        grid_spec=pltpu.PrefetchScalarGridSpec(
            num_scalar_prefetch=0,
            grid=(grid_b,),
            in_specs=[
                pl.BlockSpec((bt, n, dim), lambda bi: (bi, 0, 0)),            # x
                pl.BlockSpec((dim, 2 * dim), lambda bi: (0, 0)),              # W_kv^T (bf16)
                pl.BlockSpec((n, n), lambda bi: (0, 0)),                      # pos_bias (bf16)
                pl.BlockSpec(memory_space=pltpu.MemorySpace.SMEM),            # coef (scalar)
                pl.BlockSpec((dim, dim), lambda bi: (0, 0)),                  # W_out^T (bf16)
                pl.BlockSpec((1, dim), lambda bi: (0, 0)),                    # b_out
            ],
            out_specs=pl.BlockSpec((bt, n, dim), lambda bi: (bi, 0, 0)),
            scratch_shapes=[
                pltpu.VMEM((bt, n, 2 * dim), jnp.bfloat16),   # kv staging (bf16)
                pltpu.VMEM((bt, n, dim), jnp.bfloat16),       # head-output slab (bf16)
            ],
        ),
        compiler_params=pltpu.CompilerParams(
            dimension_semantics=("parallel",),
            vmem_limit_bytes=vmem_limit),
    )(x, wkv_t, pos_bias, coef, wout_t, b_out2)
    # TODO(synk): for n >~ 2k add a query-row grid axis + online softmax so the
    # (n, n) bias/logits tiles stay inside v7x's 64 MiB VMEM.


# ----------------------------------------------------------------------------
# Pure-JAX reference (mirrors the PyTorch forward) for a sanity check.
# ----------------------------------------------------------------------------
def attention_kv_ref(x, W_kv, W_out, b_out, w_pos, b_pos, pos, *, heads):
    b, n, dim = x.shape
    dh = dim // heads
    scale = dim ** (-0.5)
    kv = x @ W_kv.T                                            # (b, n, 2*dim)
    k = kv[:, :, :dim].reshape(b, n, heads, dh).transpose(0, 2, 1, 3)
    v = kv[:, :, dim:].reshape(b, n, heads, dh).transpose(0, 2, 1, 3)
    dots = jnp.einsum('bhid,bhjd->bhij', k, k) * scale
    dots = dots[..., None] + pos[None, None]                   # (b,h,n,n,P)
    dots = jnp.einsum('bhijp,p->bhij', dots, w_pos[0]) + b_pos[0]
    attn = jax.nn.softmax(dots, axis=-1)
    out = jnp.einsum('bhij,bhjd->bhid', attn, v)
    out = out.transpose(0, 2, 1, 3).reshape(b, n, dim)
    return out @ W_out.T + b_out


if __name__ == "__main__":
    # Small shapes consistent with the module: x is (b, n, dim).
    B, N, DIM, HEADS = 2, 8, 32, 8

    key = jax.random.PRNGKey(0)
    kx, kkv, kwo, kbo, kwp, kbp = jax.random.split(key, 6)
    x = jax.random.normal(kx, (B, N, DIM), dtype=jnp.float32)
    W_kv = jax.random.normal(kkv, (2 * DIM, DIM), dtype=jnp.float32) * 0.05
    W_out = jax.random.normal(kwo, (DIM, DIM), dtype=jnp.float32) * 0.05
    b_out = jax.random.normal(kbo, (DIM,), dtype=jnp.float32) * 0.05
    w_pos = jax.random.normal(kwp, (1, POS_DIM), dtype=jnp.float32) * 0.05
    b_pos = jax.random.normal(kbp, (1,), dtype=jnp.float32) * 0.05

    # Global pos_embeddings buffer (1, 100, 100, POS_DIM), then pos[:, :n, :n, :].
    pos_embeddings = positional_encoding_2d(POS_DIM, 100, 100)
    pos = pos_embeddings[0, :N, :N, :]                         # (n, n, POS_DIM)

    out = attention_kv(x, W_kv, W_out, b_out, w_pos, b_pos, pos, heads=HEADS)
    out = jax.block_until_ready(out)

    ref = attention_kv_ref(x, W_kv, W_out, b_out, w_pos, b_pos, pos, heads=HEADS)
    assert out.shape == (B, N, DIM)
    # bf16 MXU operands / bf16 pos_bias + approx EUP reciprocal vs. a pure-f32
    # reference: observed error is ~1e-3 at these magnitudes; 2e-2 gives margin.
    assert jnp.allclose(out, ref, atol=2e-2, rtol=2e-2), "mismatch vs reference"

    print("KERNEL_OK")
</pallas_src>

<mosaic_0001>
module attributes {stable_mosaic.version = 11 : i64} {
  func.func @attention_kv_kernel(%arg0: i32, %arg1: memref<1x8x32xf32, #tpu.memory_space<vmem>>, %arg2: memref<32x64xbf16, #tpu.memory_space<vmem>>, %arg3: memref<8x8xbf16, #tpu.memory_space<vmem>>, %arg4: memref<1xf32, #tpu.memory_space<smem>>, %arg5: memref<32x32xbf16, #tpu.memory_space<vmem>>, %arg6: memref<1x32xf32, #tpu.memory_space<vmem>>, %arg7: memref<1x8x32xf32, #tpu.memory_space<vmem>>, %arg8: memref<1x8x64xbf16, #tpu.memory_space<vmem>>, %arg9: memref<1x8x32xbf16, #tpu.memory_space<vmem>>) attributes {dimension_semantics = [#tpu.dimension_semantics<parallel>], iteration_bounds = array<i64: 2>, scalar_prefetch = 0 : i64, scratch_operands = 2 : i64, tpu.core_type = #tpu.core_type<tc>, window_params = [{transform_indices = @transform_0, window_bounds = array<i64: 1, 8, 32>}, {pipeline_mode = #tpu.pipeline_mode<synchronous>, transform_indices = @transform_1, window_bounds = array<i64: 32, 64>}, {pipeline_mode = #tpu.pipeline_mode<synchronous>, transform_indices = @transform_2, window_bounds = array<i64: 8, 8>}, {transform_indices = @transform_3, window_bounds = array<i64: 1>}, {pipeline_mode = #tpu.pipeline_mode<synchronous>, transform_indices = @transform_4, window_bounds = array<i64: 32, 32>}, {pipeline_mode = #tpu.pipeline_mode<synchronous>, transform_indices = @transform_5, window_bounds = array<i64: 1, 32>}, {transform_indices = @transform_6, window_bounds = array<i64: 1, 8, 32>}]} {
    %c0 = arith.constant 0 : index
    %c0_0 = arith.constant 0 : index
    %c0_1 = arith.constant 0 : index
    %0 = vector.load %arg1[%c0, %c0_0, %c0_1] : memref<1x8x32xf32, #tpu.memory_space<vmem>>, vector<1x8x32xf32>
    %1 = vector.shape_cast %0 : vector<1x8x32xf32> to vector<8x32xf32>
    %2 = arith.truncf %1 : vector<8x32xf32> to vector<8x32xbf16>
    %c0_2 = arith.constant 0 : index
    %c0_3 = arith.constant 0 : index
    %3 = vector.load %arg2[%c0_2, %c0_3] : memref<32x64xbf16, #tpu.memory_space<vmem>>, vector<32x64xbf16>
    %cst = arith.constant dense<0.000000e+00> : vector<8x64xf32>
    %4 = tpu.matmul %2, %3, %cst {dimension_numbers = #tpu.dot_dimension_numbers<[1], [0], [0], [1], [0, 0, 1, 1], [], []>} : vector<8x32xbf16>, vector<32x64xbf16>, vector<8x64xf32> -> vector<8x64xf32>
    %5 = vector.shape_cast %4 : vector<8x64xf32> to vector<1x8x64xf32>
    %6 = arith.truncf %5 : vector<1x8x64xf32> to vector<1x8x64xbf16>
    %c0_4 = arith.constant 0 : index
    %c0_5 = arith.constant 0 : index
    %c0_6 = arith.constant 0 : index
    %7 = vector.load %arg8[%c0_4, %c0_5, %c0_6] : memref<1x8x64xbf16, #tpu.memory_space<vmem>>, vector<1x8x64xbf16>
    tpu.vector_store %arg8[%c0_4, %c0_5, %c0_6], %6 {strides = array<i32>} : memref<1x8x64xbf16, #tpu.memory_space<vmem>>, vector<1x8x64xbf16>,
    %c0_7 = arith.constant 0 : index
    %8 = memref.load %arg4[%c0_7] : memref<1xf32, #tpu.memory_space<smem>>
    %c0_8 = arith.constant 0 : index
    %c0_9 = arith.constant 0 : index
    %c0_10 = arith.constant 0 : index
    %9 = vector.load %arg8[%c0_8, %c0_9, %c0_10] : memref<1x8x64xbf16, #tpu.memory_space<vmem>>, vector<1x8x64xbf16>
    %10 = vector.shape_cast %9 : vector<1x8x64xbf16> to vector<8x64xbf16>
    %11 = vector.extract_strided_slice %10 {offsets = [0, 0], sizes = [8, 4], strides = [1, 1]} : vector<8x64xbf16> to vector<8x4xbf16>
    %12 = vector.extract_strided_slice %10 {offsets = [0, 32], sizes = [8, 4], strides = [1, 1]} : vector<8x64xbf16> to vector<8x4xbf16>
    %13 = arith.extf %11 : vector<8x4xbf16> to vector<8x4xf32>
    %14 = vector.broadcast %8 : f32 to vector<8x4xf32>
    %15 = arith.mulf %13, %14 : vector<8x4xf32>
    %16 = arith.truncf %15 : vector<8x4xf32> to vector<8x4xbf16>
    %cst_11 = arith.constant dense<0.000000e+00> : vector<8x8xf32>
    %17 = tpu.matmul %16, %11, %cst_11 {dimension_numbers = #tpu.dot_dimension_numbers<[1], [1], [0], [0], [0, 0, 1, 0], [], []>} : vector<8x4xbf16>, vector<8x4xbf16>, vector<8x8xf32> -> vector<8x8xf32>
    %c0_12 = arith.constant 0 : index
    %c0_13 = arith.constant 0 : index
    %18 = vector.load %arg3[%c0_12, %c0_13] : memref<8x8xbf16, #tpu.memory_space<vmem>>, vector<8x8xbf16>
    %19 = arith.extf %18 : vector<8x8xbf16> to vector<8x8xf32>
    %20 = arith.addf %17, %19 : vector<8x8xf32>
    %cst_14 = arith.constant dense<0xFF800000> : vector<8xf32>
    %21 = vector.multi_reduction <maximumf>, %20, %cst_14 [1] : vector<8x8xf32> to vector<8xf32>
    %22 = vector.shape_cast %21 : vector<8xf32> to vector<8x1xf32>
    %23 = vector.broadcast %22 : vector<8x1xf32> to vector<8x8xf32>
    %24 = arith.subf %20, %23 : vector<8x8xf32>
    %25 = math.exp %24 : vector<8x8xf32>
    %cst_15 = arith.constant dense<0.000000e+00> : vector<8xf32>
    %26 = vector.multi_reduction <add>, %25, %cst_15 [1] : vector<8x8xf32> to vector<8xf32>
    %27 = vector.shape_cast %26 : vector<8xf32> to vector<8x1xf32>
    %28 = arith.truncf %25 : vector<8x8xf32> to vector<8x8xbf16>
    %cst_16 = arith.constant dense<0.000000e+00> : vector<8x4xf32>
    %29 = tpu.matmul %28, %12, %cst_16 {dimension_numbers = #tpu.dot_dimension_numbers<[1], [0], [0], [1], [0, 0, 1, 1], [], []>} : vector<8x8xbf16>, vector<8x4xbf16>, vector<8x4xf32> -> vector<8x4xf32>
    %30 = tpu.reciprocal %27 {approx = true} : vector<8x1xf32> -> vector<8x1xf32>
    %31 = vector.broadcast %30 : vector<8x1xf32> to vector<8x4xf32>
    %32 = arith.mulf %29, %31 : vector<8x4xf32>
    %33 = vector.extract_strided_slice %10 {offsets = [0, 4], sizes = [8, 4], strides = [1, 1]} : vector<8x64xbf16> to vector<8x4xbf16>
    %34 = vector.extract_strided_slice %10 {offsets = [0, 36], sizes = [8, 4], strides = [1, 1]} : vector<8x64xbf16> to vector<8x4xbf16>
    %35 = arith.extf %33 : vector<8x4xbf16> to vector<8x4xf32>
    %36 = vector.broadcast %8 : f32 to vector<8x4xf32>
    %37 = arith.mulf %35, %36 : vector<8x4xf32>
    %38 = arith.truncf %37 : vector<8x4xf32> to vector<8x4xbf16>
    %cst_17 = arith.constant dense<0.000000e+00> : vector<8x8xf32>
    %39 = tpu.matmul %38, %33, %cst_17 {dimension_numbers = #tpu.dot_dimension_numbers<[1], [1], [0], [0], [0, 0, 1, 0], [], []>} : vector<8x4xbf16>, vector<8x4xbf16>, vector<8x8xf32> -> vector<8x8xf32>
    %c0_18 = arith.constant 0 : index
    %c0_19 = arith.constant 0 : index
    %40 = vector.load %arg3[%c0_18, %c0_19] : memref<8x8xbf16, #tpu.memory_space<vmem>>, vector<8x8xbf16>
    %41 = arith.extf %40 : vector<8x8xbf16> to vector<8x8xf32>
    %42 = arith.addf %39, %41 : vector<8x8xf32>
    %cst_20 = arith.constant dense<0xFF800000> : vector<8xf32>
    %43 = vector.multi_reduction <maximumf>, %42, %cst_20 [1] : vector<8x8xf32> to vector<8xf32>
    %44 = vector.shape_cast %43 : vector<8xf32> to vector<8x1xf32>
    %45 = vector.broadcast %44 : vector<8x1xf32> to vector<8x8xf32>
    %46 = arith.subf %42, %45 : vector<8x8xf32>
    %47 = math.exp %46 : vector<8x8xf32>
    %cst_21 = arith.constant dense<0.000000e+00> : vector<8xf32>
    %48 = vector.multi_reduction <add>, %47, %cst_21 [1] : vector<8x8xf32> to vector<8xf32>
    %49 = vector.shape_cast %48 : vector<8xf32> to vector<8x1xf32>
    %50 = arith.truncf %47 : vector<8x8xf32> to vector<8x8xbf16>
    %cst_22 = arith.constant dense<0.000000e+00> : vector<8x4xf32>
    %51 = tpu.matmul %50, %34, %cst_22 {dimension_numbers = #tpu.dot_dimension_numbers<[1], [0], [0], [1], [0, 0, 1, 1], [], []>} : vector<8x8xbf16>, vector<8x4xbf16>, vector<8x4xf32> -> vector<8x4xf32>
    %52 = tpu.reciprocal %49 {approx = true} : vector<8x1xf32> -> vector<8x1xf32>
    %53 = vector.broadcast %52 : vector<8x1xf32> to vector<8x4xf32>
    %54 = arith.mulf %51, %53 : vector<8x4xf32>
    %55 = vector.extract_strided_slice %10 {offsets = [0, 8], sizes = [8, 4], strides = [1, 1]} : vector<8x64xbf16> to vector<8x4xbf16>
    %56 = vector.extract_strided_slice %10 {offsets = [0, 40], sizes = [8, 4], strides = [1, 1]} : vector<8x64xbf16> to vector<8x4xbf16>
    %57 = arith.extf %55 : vector<8x4xbf16> to vector<8x4xf32>
    %58 = vector.broadcast %8 : f32 to vector<8x4xf32>
    %59 = arith.mulf %57, %58 : vector<8x4xf32>
    %60 = arith.truncf %59 : vector<8x4xf32> to vector<8x4xbf16>
    %cst_23 = arith.constant dense<0.000000e+00> : vector<8x8xf32>
    %61 = tpu.matmul %60, %55, %cst_23 {dimension_numbers = #tpu.dot_dimension_numbers<[1], [1], [0], [0], [0, 0, 1, 0], [], []>} : vector<8x4xbf16>, vector<8x4xbf16>, vector<8x8xf32> -> vector<8x8xf32>
    %c0_24 = arith.constant 0 : index
    %c0_25 = arith.constant 0 : index
    %62 = vector.load %arg3[%c0_24, %c0_25] : memref<8x8xbf16, #tpu.memory_space<vmem>>, vector<8x8xbf16>
    %63 = arith.extf %62 : vector<8x8xbf16> to vector<8x8xf32>
    %64 = arith.addf %61, %63 : vector<8x8xf32>
    %cst_26 = arith.constant dense<0xFF800000> : vector<8xf32>
    %65 = vector.multi_reduction <maximumf>, %64, %cst_26 [1] : vector<8x8xf32> to vector<8xf32>
    %66 = vector.shape_cast %65 : vector<8xf32> to vector<8x1xf32>
    %67 = vector.broadcast %66 : vector<8x1xf32> to vector<8x8xf32>
    %68 = arith.subf %64, %67 : vector<8x8xf32>
    %69 = math.exp %68 : vector<8x8xf32>
    %cst_27 = arith.constant dense<0.000000e+00> : vector<8xf32>
    %70 = vector.multi_reduction <add>, %69, %cst_27 [1] : vector<8x8xf32> to vector<8xf32>
    %71 = vector.shape_cast %70 : vector<8xf32> to vector<8x1xf32>
    %72 = arith.truncf %69 : vector<8x8xf32> to vector<8x8xbf16>
    %cst_28 = arith.constant dense<0.000000e+00> : vector<8x4xf32>
    %73 = tpu.matmul %72, %56, %cst_28 {dimension_numbers = #tpu.dot_dimension_numbers<[1], [0], [0], [1], [0, 0, 1, 1], [], []>} : vector<8x8xbf16>, vector<8x4xbf16>, vector<8x4xf32> -> vector<8x4xf32>
    %74 = tpu.reciprocal %71 {approx = true} : vector<8x1xf32> -> vector<8x1xf32>
    %75 = vector.broadcast %74 : vector<8x1xf32> to vector<8x4xf32>
    %76 = arith.mulf %73, %75 : vector<8x4xf32>
    %77 = vector.extract_strided_slice %10 {offsets = [0, 12], sizes = [8, 4], strides = [1, 1]} : vector<8x64xbf16> to vector<8x4xbf16>
    %78 = vector.extract_strided_slice %10 {offsets = [0, 44], sizes = [8, 4], strides = [1, 1]} : vector<8x64xbf16> to vector<8x4xbf16>
    %79 = arith.extf %77 : vector<8x4xbf16> to vector<8x4xf32>
    %80 = vector.broadcast %8 : f32 to vector<8x4xf32>
    %81 = arith.mulf %79, %80 : vector<8x4xf32>
    %82 = arith.truncf %81 : vector<8x4xf32> to vector<8x4xbf16>
    %cst_29 = arith.constant dense<0.000000e+00> : vector<8x8xf32>
    %83 = tpu.matmul %82, %77, %cst_29 {dimension_numbers = #tpu.dot_dimension_numbers<[1], [1], [0], [0], [0, 0, 1, 0], [], []>} : vector<8x4xbf16>, vector<8x4xbf16>, vector<8x8xf32> -> vector<8x8xf32>
    %c0_30 = arith.constant 0 : index
    %c0_31 = arith.constant 0 : index
    %84 = vector.load %arg3[%c0_30, %c0_31] : memref<8x8xbf16, #tpu.memory_space<vmem>>, vector<8x8xbf16>
    %85 = arith.extf %84 : vector<8x8xbf16> to vector<8x8xf32>
    %86 = arith.addf %83, %85 : vector<8x8xf32>
    %cst_32 = arith.constant dense<0xFF800000> : vector<8xf32>
    %87 = vector.multi_reduction <maximumf>, %86, %cst_32 [1] : vector<8x8xf32> to vector<8xf32>
    %88 = vector.shape_cast %87 : vector<8xf32> to vector<8x1xf32>
    %89 = vector.broadcast %88 : vector<8x1xf32> to vector<8x8xf32>
    %90 = arith.subf %86, %89 : vector<8x8xf32>
    %91 = math.exp %90 : vector<8x8xf32>
    %cst_33 = arith.constant dense<0.000000e+00> : vector<8xf32>
    %92 = vector.multi_reduction <add>, %91, %cst_33 [1] : vector<8x8xf32> to vector<8xf32>
    %93 = vector.shape_cast %92 : vector<8xf32> to vector<8x1xf32>
    %94 = arith.truncf %91 : vector<8x8xf32> to vector<8x8xbf16>
    %cst_34 = arith.constant dense<0.000000e+00> : vector<8x4xf32>
    %95 = tpu.matmul %94, %78, %cst_34 {dimension_numbers = #tpu.dot_dimension_numbers<[1], [0], [0], [1], [0, 0, 1, 1], [], []>} : vector<8x8xbf16>, vector<8x4xbf16>, vector<8x4xf32> -> vector<8x4xf32>
    %96 = tpu.reciprocal %93 {approx = true} : vector<8x1xf32> -> vector<8x1xf32>
    %97 = vector.broadcast %96 : vector<8x1xf32> to vector<8x4xf32>
    %98 = arith.mulf %95, %97 : vector<8x4xf32>
    %99 = vector.extract_strided_slice %10 {offsets = [0, 16], sizes = [8, 4], strides = [1, 1]} : vector<8x64xbf16> to vector<8x4xbf16>
    %100 = vector.extract_strided_slice %10 {offsets = [0, 48], sizes = [8, 4], strides = [1, 1]} : vector<8x64xbf16> to vector<8x4xbf16>
    %101 = arith.extf %99 : vector<8x4xbf16> to vector<8x4xf32>
    %102 = vector.broadcast %8 : f32 to vector<8x4xf32>
    %103 = arith.mulf %101, %102 : vector<8x4xf32>
    %104 = arith.truncf %103 : vector<8x4xf32> to vector<8x4xbf16>
    %cst_35 = arith.constant dense<0.000000e+00> : vector<8x8xf32>
    %105 = tpu.matmul %104, %99, %cst_35 {dimension_numbers = #tpu.dot_dimension_numbers<[1], [1], [0], [0], [0, 0, 1, 0], [], []>} : vector<8x4xbf16>, vector<8x4xbf16>, vector<8x8xf32> -> vector<8x8xf32>
    %c0_36 = arith.constant 0 : index
    %c0_37 = arith.constant 0 : index
    %106 = vector.load %arg3[%c0_36, %c0_37] : memref<8x8xbf16, #tpu.memory_space<vmem>>, vector<8x8xbf16>
    %107 = arith.extf %106 : vector<8x8xbf16> to vector<8x8xf32>
    %108 = arith.addf %105, %107 : vector<8x8xf32>
    %cst_38 = arith.constant dense<0xFF800000> : vector<8xf32>
    %109 = vector.multi_reduction <maximumf>, %108, %cst_38 [1] : vector<8x8xf32> to vector<8xf32>
    %110 = vector.shape_cast %109 : vector<8xf32> to vector<8x1xf32>
    %111 = vector.broadcast %110 : vector<8x1xf32> to vector<8x8xf32>
    %112 = arith.subf %108, %111 : vector<8x8xf32>
    %113 = math.exp %112 : vector<8x8xf32>
    %cst_39 = arith.constant dense<0.000000e+00> : vector<8xf32>
    %114 = vector.multi_reduction <add>, %113, %cst_39 [1] : vector<8x8xf32> to vector<8xf32>
    %115 = vector.shape_cast %114 : vector<8xf32> to vector<8x1xf32>
    %116 = arith.truncf %113 : vector<8x8xf32> to vector<8x8xbf16>
    %cst_40 = arith.constant dense<0.000000e+00> : vector<8x4xf32>
    %117 = tpu.matmul %116, %100, %cst_40 {dimension_numbers = #tpu.dot_dimension_numbers<[1], [0], [0], [1], [0, 0, 1, 1], [], []>} : vector<8x8xbf16>, vector<8x4xbf16>, vector<8x4xf32> -> vector<8x4xf32>
    %118 = tpu.reciprocal %115 {approx = true} : vector<8x1xf32> -> vector<8x1xf32>
    %119 = vector.broadcast %118 : vector<8x1xf32> to vector<8x4xf32>
    %120 = arith.mulf %117, %119 : vector<8x4xf32>
    %121 = vector.extract_strided_slice %10 {offsets = [0, 20], sizes = [8, 4], strides = [1, 1]} : vector<8x64xbf16> to vector<8x4xbf16>
    %122 = vector.extract_strided_slice %10 {offsets = [0, 52], sizes = [8, 4], strides = [1, 1]} : vector<8x64xbf16> to vector<8x4xbf16>
    %123 = arith.extf %121 : vector<8x4xbf16> to vector<8x4xf32>
    %124 = vector.broadcast %8 : f32 to vector<8x4xf32>
    %125 = arith.mulf %123, %124 : vector<8x4xf32>
    %126 = arith.truncf %125 : vector<8x4xf32> to vector<8x4xbf16>
    %cst_41 = arith.constant dense<0.000000e+00> : vector<8x8xf32>
    %127 = tpu.matmul %126, %121, %cst_41 {dimension_numbers = #tpu.dot_dimension_numbers<[1], [1], [0], [0], [0, 0, 1, 0], [], []>} : vector<8x4xbf16>, vector<8x4xbf16>, vector<8x8xf32> -> vector<8x8xf32>
    %c0_42 = arith.constant 0 : index
    %c0_43 = arith.constant 0 : index
    %128 = vector.load %arg3[%c0_42, %c0_43] : memref<8x8xbf16, #tpu.memory_space<vmem>>, vector<8x8xbf16>
    %129 = arith.extf %128 : vector<8x8xbf16> to vector<8x8xf32>
    %130 = arith.addf %127, %129 : vector<8x8xf32>
    %cst_44 = arith.constant dense<0xFF800000> : vector<8xf32>
    %131 = vector.multi_reduction <maximumf>, %130, %cst_44 [1] : vector<8x8xf32> to vector<8xf32>
    %132 = vector.shape_cast %131 : vector<8xf32> to vector<8x1xf32>
    %133 = vector.broadcast %132 : vector<8x1xf32> to vector<8x8xf32>
    %134 = arith.subf %130, %133 : vector<8x8xf32>
    %135 = math.exp %134 : vector<8x8xf32>
    %cst_45 = arith.constant dense<0.000000e+00> : vector<8xf32>
    %136 = vector.multi_reduction <add>, %135, %cst_45 [1] : vector<8x8xf32> to vector<8xf32>
    %137 = vector.shape_cast %136 : vector<8xf32> to vector<8x1xf32>
    %138 = arith.truncf %135 : vector<8x8xf32> to vector<8x8xbf16>
    %cst_46 = arith.constant dense<0.000000e+00> : vector<8x4xf32>
    %139 = tpu.matmul %138, %122, %cst_46 {dimension_numbers = #tpu.dot_dimension_numbers<[1], [0], [0], [1], [0, 0, 1, 1], [], []>} : vector<8x8xbf16>, vector<8x4xbf16>, vector<8x4xf32> -> vector<8x4xf32>
    %140 = tpu.reciprocal %137 {approx = true} : vector<8x1xf32> -> vector<8x1xf32>
    %141 = vector.broadcast %140 : vector<8x1xf32> to vector<8x4xf32>
    %142 = arith.mulf %139, %141 : vector<8x4xf32>
    %143 = vector.extract_strided_slice %10 {offsets = [0, 24], sizes = [8, 4], strides = [1, 1]} : vector<8x64xbf16> to vector<8x4xbf16>
    %144 = vector.extract_strided_slice %10 {offsets = [0, 56], sizes = [8, 4], strides = [1, 1]} : vector<8x64xbf16> to vector<8x4xbf16>
    %145 = arith.extf %143 : vector<8x4xbf16> to vector<8x4xf32>
    %146 = vector.broadcast %8 : f32 to vector<8x4xf32>
    %147 = arith.mulf %145, %146 : vector<8x4xf32>
    %148 = arith.truncf %147 : vector<8x4xf32> to vector<8x4xbf16>
    %cst_47 = arith.constant dense<0.000000e+00> : vector<8x8xf32>
    %149 = tpu.matmul %148, %143, %cst_47 {dimension_numbers = #tpu.dot_dimension_numbers<[1], [1], [0], [0], [0, 0, 1, 0], [], []>} : vector<8x4xbf16>, vector<8x4xbf16>, vector<8x8xf32> -> vector<8x8xf32>
    %c0_48 = arith.constant 0 : index
    %c0_49 = arith.constant 0 : index
    %150 = vector.load %arg3[%c0_48, %c0_49] : memref<8x8xbf16, #tpu.memory_space<vmem>>, vector<8x8xbf16>
    %151 = arith.extf %150 : vector<8x8xbf16> to vector<8x8xf32>
    %152 = arith.addf %149, %151 : vector<8x8xf32>
    %cst_50 = arith.constant dense<0xFF800000> : vector<8xf32>
    %153 = vector.multi_reduction <maximumf>, %152, %cst_50 [1] : vector<8x8xf32> to vector<8xf32>
    %154 = vector.shape_cast %153 : vector<8xf32> to vector<8x1xf32>
    %155 = vector.broadcast %154 : vector<8x1xf32> to vector<8x8xf32>
    %156 = arith.subf %152, %155 : vector<8x8xf32>
    %157 = math.exp %156 : vector<8x8xf32>
    %cst_51 = arith.constant dense<0.000000e+00> : vector<8xf32>
    %158 = vector.multi_reduction <add>, %157, %cst_51 [1] : vector<8x8xf32> to vector<8xf32>
    %159 = vector.shape_cast %158 : vector<8xf32> to vector<8x1xf32>
    %160 = arith.truncf %157 : vector<8x8xf32> to vector<8x8xbf16>
    %cst_52 = arith.constant dense<0.000000e+00> : vector<8x4xf32>
    %161 = tpu.matmul %160, %144, %cst_52 {dimension_numbers = #tpu.dot_dimension_numbers<[1], [0], [0], [1], [0, 0, 1, 1], [], []>} : vector<8x8xbf16>, vector<8x4xbf16>, vector<8x4xf32> -> vector<8x4xf32>
    %162 = tpu.reciprocal %159 {approx = true} : vector<8x1xf32> -> vector<8x1xf32>
    %163 = vector.broadcast %162 : vector<8x1xf32> to vector<8x4xf32>
    %164 = arith.mulf %161, %163 : vector<8x4xf32>
    %165 = vector.extract_strided_slice %10 {offsets = [0, 28], sizes = [8, 4], strides = [1, 1]} : vector<8x64xbf16> to vector<8x4xbf16>
    %166 = vector.extract_strided_slice %10 {offsets = [0, 60], sizes = [8, 4], strides = [1, 1]} : vector<8x64xbf16> to vector<8x4xbf16>
    %167 = arith.extf %165 : vector<8x4xbf16> to vector<8x4xf32>
    %168 = vector.broadcast %8 : f32 to vector<8x4xf32>
    %169 = arith.mulf %167, %168 : vector<8x4xf32>
    %170 = arith.truncf %169 : vector<8x4xf32> to vector<8x4xbf16>
    %cst_53 = arith.constant dense<0.000000e+00> : vector<8x8xf32>
    %171 = tpu.matmul %170, %165, %cst_53 {dimension_numbers = #tpu.dot_dimension_numbers<[1], [1], [0], [0], [0, 0, 1, 0], [], []>} : vector<8x4xbf16>, vector<8x4xbf16>, vector<8x8xf32> -> vector<8x8xf32>
    %c0_54 = arith.constant 0 : index
    %c0_55 = arith.constant 0 : index
    %172 = vector.load %arg3[%c0_54, %c0_55] : memref<8x8xbf16, #tpu.memory_space<vmem>>, vector<8x8xbf16>
    %173 = arith.extf %172 : vector<8x8xbf16> to vector<8x8xf32>
    %174 = arith.addf %171, %173 : vector<8x8xf32>
    %cst_56 = arith.constant dense<0xFF800000> : vector<8xf32>
    %175 = vector.multi_reduction <maximumf>, %174, %cst_56 [1] : vector<8x8xf32> to vector<8xf32>
    %176 = vector.shape_cast %175 : vector<8xf32> to vector<8x1xf32>
    %177 = vector.broadcast %176 : vector<8x1xf32> to vector<8x8xf32>
    %178 = arith.subf %174, %177 : vector<8x8xf32>
    %179 = math.exp %178 : vector<8x8xf32>
    %cst_57 = arith.constant dense<0.000000e+00> : vector<8xf32>
    %180 = vector.multi_reduction <add>, %179, %cst_57 [1] : vector<8x8xf32> to vector<8xf32>
    %181 = vector.shape_cast %180 : vector<8xf32> to vector<8x1xf32>
    %182 = arith.truncf %179 : vector<8x8xf32> to vector<8x8xbf16>
    %cst_58 = arith.constant dense<0.000000e+00> : vector<8x4xf32>
    %183 = tpu.matmul %182, %166, %cst_58 {dimension_numbers = #tpu.dot_dimension_numbers<[1], [0], [0], [1], [0, 0, 1, 1], [], []>} : vector<8x8xbf16>, vector<8x4xbf16>, vector<8x4xf32> -> vector<8x4xf32>
    %184 = tpu.reciprocal %181 {approx = true} : vector<8x1xf32> -> vector<8x1xf32>
    %185 = vector.broadcast %184 : vector<8x1xf32> to vector<8x4xf32>
    %186 = arith.mulf %183, %185 : vector<8x4xf32>
    %187 = tpu.concatenate %32, %54, %76, %98, %120, %142, %164, %186 in 1 : vector<8x4xf32>, vector<8x4xf32>, vector<8x4xf32>, vector<8x4xf32>, vector<8x4xf32>, vector<8x4xf32>, vector<8x4xf32>, vector<8x4xf32> -> vector<8x32xf32>
    %188 = arith.truncf %187 : vector<8x32xf32> to vector<8x32xbf16>
    %c0_59 = arith.constant 0 : index
    %c0_60 = arith.constant 0 : index
    %c0_61 = arith.constant 0 : index
    %189 = vector.load %arg9[%c0_59, %c0_60, %c0_61] : memref<1x8x32xbf16, #tpu.memory_space<vmem>>, vector<1x8x32xbf16>
    %190 = vector.shape_cast %189 : vector<1x8x32xbf16> to vector<8x32xbf16>
    %191 = vector.shape_cast %188 : vector<8x32xbf16> to vector<1x8x32xbf16>
    tpu.vector_store %arg9[%c0_59, %c0_60, %c0_61], %191 {strides = array<i32>} : memref<1x8x32xbf16, #tpu.memory_space<vmem>>, vector<1x8x32xbf16>,
    %c0_62 = arith.constant 0 : index
    %c0_63 = arith.constant 0 : index
    %c0_64 = arith.constant 0 : index
    %192 = vector.load %arg9[%c0_62, %c0_63, %c0_64] : memref<1x8x32xbf16, #tpu.memory_space<vmem>>, vector<1x8x32xbf16>
    %193 = vector.shape_cast %192 : vector<1x8x32xbf16> to vector<8x32xbf16>
    %c0_65 = arith.constant 0 : index
    %c0_66 = arith.constant 0 : index
    %194 = vector.load %arg5[%c0_65, %c0_66] : memref<32x32xbf16, #tpu.memory_space<vmem>>, vector<32x32xbf16>
    %cst_67 = arith.constant dense<0.000000e+00> : vector<8x32xf32>
    %195 = tpu.matmul %193, %194, %cst_67 {dimension_numbers = #tpu.dot_dimension_numbers<[1], [0], [0], [1], [0, 0, 1, 1], [], []>} : vector<8x32xbf16>, vector<32x32xbf16>, vector<8x32xf32> -> vector<8x32xf32>
    %c0_68 = arith.constant 0 : index
    %c0_69 = arith.constant 0 : index
    %196 = vector.load %arg6[%c0_68, %c0_69] : memref<1x32xf32, #tpu.memory_space<vmem>>, vector<1x32xf32>
    %197 = vector.broadcast %196 : vector<1x32xf32> to vector<8x32xf32>
    %198 = arith.addf %195, %197 : vector<8x32xf32>
    %199 = vector.shape_cast %198 : vector<8x32xf32> to vector<1x8x32xf32>
    %c0_70 = arith.constant 0 : index
    %c0_71 = arith.constant 0 : index
    %c0_72 = arith.constant 0 : index
    %200 = vector.load %arg7[%c0_70, %c0_71, %c0_72] : memref<1x8x32xf32, #tpu.memory_space<vmem>>, vector<1x8x32xf32>
    tpu.vector_store %arg7[%c0_70, %c0_71, %c0_72], %199 {strides = array<i32>} : memref<1x8x32xf32, #tpu.memory_space<vmem>>, vector<1x8x32xf32>,
    return
  }
  func.func @transform_0(%arg0: i32) -> (i32, i32, i32) {
    %c0_i32 = arith.constant 0 : i32
    %c0_i32_0 = arith.constant 0 : i32
    %c0_i32_1 = arith.constant 0 : i32
    return %arg0, %c0_i32, %c0_i32_0 : i32, i32, i32
  }
  func.func @transform_1(%arg0: i32) -> (i32, i32) {
    %c0_i32 = arith.constant 0 : i32
    %c0_i32_0 = arith.constant 0 : i32
    %c0_i32_1 = arith.constant 0 : i32
    return %c0_i32, %c0_i32_0 : i32, i32
  }
  func.func @transform_2(%arg0: i32) -> (i32, i32) {
    %c0_i32 = arith.constant 0 : i32
    %c0_i32_0 = arith.constant 0 : i32
    %c0_i32_1 = arith.constant 0 : i32
    return %c0_i32, %c0_i32_0 : i32, i32
  }
  func.func @transform_3(%arg0: i32) -> i32 {
    %c0_i32 = arith.constant 0 : i32
    %c0_i32_0 = arith.constant 0 : i32
    return %c0_i32 : i32
  }
  func.func @transform_4(%arg0: i32) -> (i32, i32) {
    %c0_i32 = arith.constant 0 : i32
    %c0_i32_0 = arith.constant 0 : i32
    %c0_i32_1 = arith.constant 0 : i32
    return %c0_i32, %c0_i32_0 : i32, i32
  }
  func.func @transform_5(%arg0: i32) -> (i32, i32) {
    %c0_i32 = arith.constant 0 : i32
    %c0_i32_0 = arith.constant 0 : i32
    %c0_i32_1 = arith.constant 0 : i32
    return %c0_i32, %c0_i32_0 : i32, i32
  }
  func.func @transform_6(%arg0: i32) -> (i32, i32, i32) {
    %c0_i32 = arith.constant 0 : i32
    %c0_i32_0 = arith.constant 0 : i32
    %c0_i32_1 = arith.constant 0 : i32
    return %arg0, %c0_i32, %c0_i32_0 : i32, i32, i32
  }
}

</mosaic_0001>

<bundles_post_ra>
// kernel: tpu_custom_call.1
= control target key start
LH: loop header
LB: loop body
LE: loop exit
PB: predicated region body
PF: predicated region fallthrough
CT: control target
= control target key end

     0   :  { %s2365_s0 = inlined_call_operand.hbm [shape: f32[2,8,32], index: 0, kind: input, shape index: {}]   ;;  %s2366_s1 = inlined_call_operand.hbm [shape: bf16[32,64], index: 1, kind: input, shape index: {}]   ;;  %s2367_s2 = inlined_call_operand.vmem [shape: bf16[8,8], index: 2, kind: input, shape index: {}]   ;;  %s2368_s3 = inlined_call_operand.<no memory space> [shape: f32[1], index: 3, kind: input, shape index: {}]   ;;  %s2369_s4 = inlined_call_operand.hbm [shape: bf16[32,32], index: 4, kind: input, shape index: {}]   ;;  %s2370_s5 = inlined_call_operand.vmem [shape: f32[1,32], index: 5, kind: input, shape index: {}]   ;;  %s2371_s6 = inlined_call_operand.hbm [shape: f32[2,8,32], index: 6, kind: output, shape index: {}]  }
   0x1   :  { %11 = sst [smem:[#allocation4]] %s2368_s3 }
   0x2   :  { %12 = vsyncpa [#allocation6], 0 }
   0x3   :  { %14 = vsyncpa [#allocation6 + $0x1], 0 }
   0x4   :  { %15 = vsyncpa [#allocation9], 0 }
   0x5   :  { %16 = vsyncpa [#allocation7], 0 }
   0x6   :  { %18 = vsyncpa [#allocation7 + $0x1], 0  ;;  %s2006_s23 = smov 0   ;;  %s2008_s24 = smov 0  }
   0x7   :  { %s2010_s25 = smov 0   ;;  %s2012_s26 = smov 0  }
   0x8 LB: > { %s2027_s3 = sadd.s32 4294967295, %s1936_s26   ;;  %s1468_s27 = sadd.s32 4294967294, %s1936_s26   ;;  %s1936_s26 = sphi %s2012_s26, %s2393_s26   ;;  %s1932_s25 = sphi %s2010_s25, %s2392_s25   ;;  %s1928_s24 = sphi %s2008_s24, %s2391_s24   ;;  %s1924_s23 = sphi %s2006_s23, %s2390_s23  }
   0x9   : > { %p44_p0 = scmp.ne.s32.totalorder %s1928_s24, %s1924_s23  ;;  %p2372_p1 = scmp.eq.s32.totalorder %s2027_s3, 0 }
   0xa   : > { %p179_p3 = scmp.eq.s32.totalorder %s1468_s27, 1  ;;  %p1469_p5 = scmp.ge.s32.totalorder %s1936_s26, 1 }
   0xb   : > { %p2036_p4 = por %p2372_p1, %p44_p0  ;;  %p186_p7 = scmp.lt.s32.totalorder %s1936_s26, 3 }
   0xc   : > { %p2041_p6 = por %p179_p3, %p44_p0  ;;  %s1938_s7 = smov [#allocation8]  }
   0xd   : > { %s2376_s28 = scalar_select %p2036_p4, 1, 0 }
   0xe   : > { %s2377_s29 = scalar_select %p2041_p6, 1, 0 }
   0xf   : > { %p2046_p8 = pnand %p1469_p5, %p186_p7  ;;  %s198_s8 = sshll.u32 %s1938_s7, 4  ;;  %s199_s8 = int_to_ptr.vmem [resolvable:$true] %s198_s8 }
  0x10   : > { %s1939_s10 = smov [#allocation10]   ;;  %s1799_s12 = scalar_lea.vmem %s199_s8, 256 }
  0x11   : > { %s2378_s30 = scalar_select %p2046_p8, 1, 0 }
  0x12   : > { %p1670_p9 = pneg %p2046_p8  ;;  %s217_s11 = sshll.u32 %s1939_s10, 4  ;;  %s218_s11 = int_to_ptr.vmem [resolvable:$true] %s217_s11 }
  0x13   : > { %p1800_p13 = scmp.ne.s32.totalorder %s199_s8, %s1799_s12  ;;  %p1807_p5 = scmp.lt.s32.totalorder %s199_s8, %s199_s8 }
  0x14   : > { %p2055_p11 = pnand %p1670_p9, %p2372_p1  ;;  %p1808_p7 = scmp.lt.s32.totalorder %s1799_s12, %s1799_s12 }
  0x16   : > { %p1790_p12 = pneg %p2055_p11  ;;  %p1809_p10 = por %p1808_p7, %p1807_p5 }
  0x18   : > { %p1802_p0 = pnand %p1800_p13, %p1790_p12 }
  0x1a   : > { %p1803_p3 = pneg %p1802_p0 }
  0x1c   : > { %p1810_p9 = pnand %p1809_p10, %p1803_p3 }
  0x1e   : > { %1813 = shalt.err (!%p1810_p9)
}
  0x1f   : > { %s1940_s13 = smov 64   ;;  %s1941_s14 = smov 4  }
  0x20   : > { %1673 = dma.hbm_to_vmem [thread:$0]  (!%p2055_p11), %s2366_s1, 256, %s199_s8, [#allocation9], %s1940_s13, %s1940_s13, %s1941_s14  }
  0x21   : > { %s1825_s17 = scalar_lea.vmem %s218_s11, 256  ;;  %p1833_p2 = scmp.lt.s32.totalorder %s218_s11, %s218_s11 }
  0x22   : > { %p1826_p1 = scmp.ne.s32.totalorder %s218_s11, %s1825_s17  ;;  %p1834_p6 = scmp.lt.s32.totalorder %s1825_s17, %s1825_s17 }
  0x24   : > { %p1828_p13 = pnand %p1826_p1, %p1790_p12  ;;  %p1835_p5 = por %p1834_p6, %p1833_p2 }
  0x26   : > { %p1829_p0 = pneg %p1828_p13 }
  0x28   : > { %p1836_p10 = pnand %p1835_p5, %p1829_p0 }
  0x2a   : > { %1839 = shalt.err (!%p1836_p10)
}
  0x2b   : > { %1676 = dma.hbm_to_vmem [thread:$0]  (!%p2055_p11), %s2369_s4, 256, %s218_s11, [#allocation9], %s1940_s13, %s1940_s13, %s1941_s14  }
  0x2c   : > { %s2078_s20 = sadd.s32 1, %s1936_s26   ;;  %s31_s21 = sadd.s32 1, %s1932_s25 }
  0x2d   : > { %s28_s22 = ssub.s32 %s1936_s26, %s2078_s20  ;;  %p38_p1 = scmp.ne.s32.totalorder %s1932_s25, %s1928_s24 }
  0x2e   : > { %p29_p2 = scmp.eq.s32.totalorder %s28_s22, 0  ;;  %p39_p6 = scmp.eq.s32.totalorder %s1936_s26, 0 }
  0x2f   : > { %p2380_p12 = scmp.eq.s32.totalorder %s2027_s3, 1  ;;  %p1687_p7 = scmp.lt.s32.totalorder %s1936_s26, 2 }
  0x30   : > { %s2094_s7 = scalar_select %p29_p2, %s1932_s25, %s31_s21  }
  0x31   : > { %p2088_p3 = por %p2380_p12, %p38_p1  ;;  %p40_p9 = por %p39_p6, %p38_p1 }
  0x32   : > { %s234_s8 = sand.u32 1, %s1932_s25   ;;  %s1474_s10 = sshll.u32 %s1936_s26, 7 }
  0x33   : > { %s2381_s27 = scalar_select %p2088_p3, 1, 0 }
  0x34   : > { %s1473_s9 = sshll.u32 %s234_s8, 3  ;;  %s2101_s13 = scalar_lea.hbm %s2365_s0, %s1474_s10 }
  0x35   : > { %s238_s14 = scalar_lea.vmem [#allocation5], %s1473_s9  ;;  %p2103_p11 = pnand %p1687_p7, %p40_p9 }
  0x36   : > { %s245_s15 = sshll.u32 %s238_s14, 4  ;;  %s235_s17 = scalar_lea.sflag [#allocation6], %s234_s8  ;;  %s246_s15 = int_to_ptr.vmem [resolvable:$true] %s245_s15 }
  0x37   : > { %s1840_s18 = scalar_lea.hbm %s2101_s13, 128  ;;  %p1842_p0 = pneg %p2103_p11 }
  0x38   : > { %p1841_p13 = scmp.ne.s32.totalorder %s2101_s13, %s1840_s18  ;;  %s1845_s22 = scalar_lea.hbm %s2365_s0, 256 }
  0x39   : > { %p1846_p1 = scmp.lt.s32.totalorder %s2101_s13, %s2365_s0  ;;  %p1847_p2 = scmp.lt.s32.totalorder %s1845_s22, %s1840_s18 }
  0x3a   : > { %p1843_p5 = pnand %p1842_p0, %p1841_p13 }
  0x3b   : > { %p1848_p6 = por %p1847_p2, %p1846_p1 }
  0x3c   : > { %p1844_p10 = pneg %p1843_p5 }
  0x3e   : > { %p1849_p12 = pnand %p1848_p6, %p1844_p10 }
  0x40   : > { %1852 = shalt.err (!%p1849_p12)
}
  0x41   : > { %s1853_s11 = scalar_lea.vmem %s246_s15, 128  ;;  %s1942_s8 = smov [#allocation5]  }
  0x42   : > { %p1854_p7 = scmp.ne.s32.totalorder %s246_s15, %s1853_s11  ;;  %s1858_s12 = sshll.u32 %s1942_s8, 4  ;;  %s1859_s12 = int_to_ptr.vmem [resolvable:$false] %s1858_s12 }
  0x43   : > { %s1860_s14 = scalar_lea.vmem %s1859_s12, 256  ;;  %p1861_p13 = scmp.lt.s32.totalorder %s246_s15, %s1859_s12 }
  0x44   : > { %p1856_p9 = pnand %p1854_p7, %p1842_p0  ;;  %p1862_p5 = scmp.lt.s32.totalorder %s1860_s14, %s1853_s11 }
  0x46   : > { %p1857_p3 = pneg %p1856_p9  ;;  %p1863_p4 = por %p1862_p5, %p1861_p13 }
  0x48   : > { %p1864_p8 = pnand %p1863_p4, %p1857_p3 }
  0x4a   : > { %1867 = shalt.err (!%p1864_p8)
}
  0x4b   : > { %1680 = dma.hbm_to_vmem [thread:$0]  (!%p2103_p11), %s2101_s13, 128, %s246_s15, %s235_s17  }
  0x4c   : > { %p2383_p10 = scmp.ne.s32.totalorder %s2378_s30, 0 }
  0x4d   : > { %s2124_s18 = sand.u32 (!%p2383_p10), 1, %s1928_s24   ;;  %p2384_p4 = scmp.ne.s32.totalorder (!%p2383_p10), %s2376_s28, 0 }
  0x4e   : > { %254 = sbr.rel (%p2383_p10) target bundleno = 1378 (0x562), region = 44  ;;  %s1476_s19 = sshll.u32 (!%p2383_p10), %s2124_s18, 3 }
  0x4f   : > { %s257_s21 = scalar_lea.sflag (!%p2383_p10), [#allocation6], %s2124_s18  ;;  %s260_s22 = scalar_lea.vmem (!%p2383_p10), [#allocation5], %s1476_s19 }
  0x53   : > { %1911 = dma.done.wait (%p2384_p4), %s257_s21, 128  }
  0x54   : > { %1913 = vsyncadd (%p2384_p4), %s257_s21, 4294967168  ;;  %p2385_p8 = scmp.eq.s32.totalorder %s2027_s3, 0 }
  0x56   : > { %1915 = dma.done.wait (%p2385_p8), [#allocation9], 512   ;;  %p2386_p3 = pmov %p2385_p8 }
  0x57   : > { %v1943_v0 = vmov 0.0   ;;  %vm1944_vm0 = vmmov 0   ;;  %v1751_v1 = vld [vmem:[#allocation8 + $0x8] sm:$0xff]   ;;  %v1752_v2 = vld [vmem:[#allocation8] sm:$0xff]   ;;  %v298_v3 = vld [vmem:[%s260_s22] sm:$0xff]  ;;  %vm316_vm1 = vcmask 261120  }
  0x58   : > { %1917 = vsyncadd (%p2386_p3), [#allocation9], 4294966784  ;;  %1546 = vmatprep.subr.bf16.mxu0 %v1943_v0  ;;  %1550 = vmatprep.mubr.msk.bf16.mxu0 %vm1944_vm0, %v1943_v0  ;;  %v299_v4 = vpack.c.bf16 %v298_v3, %v298_v3  ;;  %vm361_vm2 = vcmask 519168   ;;  %s363_s28 = sld [smem:[#allocation4]]  ;;  %vm371_vm3 = vcmask 31744   ;;  %s1945_s30 = smov 120  }
  0x59   : > { %1554 = vmatprep.subr.bf16.mxu1 %v1943_v0  ;;  %1556 = vmatprep.mubr.msk.bf16.mxu1 %vm1944_vm0, %v1943_v0  ;;  %s1946_s13 = smov 124   ;;  %s1947_s15 = smov 116   ;;  %vm437_vm4 = vcmask 1043456   ;;  %v369_v40 = vld [vmem:[%s2367_s2] sm:$0xf]  ;;  %vm418_vm5 = vcmask 64512  }
  0x5a   : > { %1547 = vmatpush3.bf16.msra.mxu0 %v1751_v1  ;;  %s1948_s16 = smov 112   ;;  %s1949_s17 = smov 108   ;;  %v2205_v41 = vunpack.c.l.bf16 %v369_v40  ;;  %vm1284_vm6 = vcmask 97280   ;;  %vm1286_vm7 = vcmask 130048   ;;  %vm1288_vm8 = vcmask 162816  }
  0x5b   : > { %1548 = vmatprep.subr.bf16.mxu0 %v1943_v0  ;;  %s1950_s10 = smov 104   ;;  %s1951_s9 = smov 100   ;;  %vm1290_vm9 = vcmask 195584   ;;  %vm1292_vm10 = vcmask 228352   ;;  %vm1295_vm11 = vcmask 257024  }
  0x5c   : > { %s1952_s11 = smov 96   ;;  %s1953_s8 = smov 92  }
  0x5d   : > { %s1954_s21 = smov 88   ;;  %s1955_s22 = smov 84  }
  0x5e   : > { %1549 = vmatpush3.bf16.msra.mxu0 %v1752_v2  ;;  %v366_v11 = vstv %s363_s28  ;;  %s1956_s28 = smov 76   ;;  %s1966_s12 = smov 28  }
  0x5f   : > { %1560 = vmatprep.subr.bf16.mxu0 %v1943_v0  ;;  %p2387_p0 = scmp.ne.s32.totalorder %s2381_s27, 0 }
  0x61   : > { %1551 = vmatmul.mubr.msk.bf16.vlgmr.msra.gmra.mxu0 %vm316_vm1, %v299_v4 }
  0x62   : > { %1562 = vmatprep.mubr.msk.bf16.mxu0 %vm1944_vm0, %v1943_v0 }
 0x121   : > { %v354_v5 = vpop.f32.mrf.mxu0 }
 0x122   : > { %v360_v6 = vpack.c.bf16 %v354_v5, %v354_v5 }
 0x123   : > { %v1552_v7 = vpop.f32.mrf.mxu0 }
 0x124   : > { %362 = vst.msk [vmem:[#allocation2] sm:$0xf] %vm361_vm2, %v360_v6 }
 0x125   : > { %v357_v8 = vpop.f32.mrf.mxu0 }
 0x127   : > { %v1553_v9 = vpop.f32.mrf.mxu0 }
 0x12b   : > { %v364_v10 = vld [vmem:[#allocation2] sm:$0xf] }
 0x12c   : > { %v365_v12 = vunpack.c.l.bf16 %v364_v10  ;;  %v376_v13 = vsel %vm371_vm3, %v364_v10, 0  ;;  %v2150_v14 = vcombine.low %v364_v10, %v364_v10 }
 0x12d   : > { %1555 = vmatpush3.bf16.xpose.msra.mxu1 %v376_v13 }
 0x12e   : > { %v367_v15 = vmul.f32 %v366_v11, %v365_v12  ;;  %596 = vrot.lane.b32.xlu1 %v2150_v14, %s1945_s30  ;;  %486 = vrot.lane.b32.xlu0 %v2150_v14, %s1946_s13 }
 0x12f   : > { %1566 = vmatprep.subr.bf16.mxu1 %v1943_v0 }
 0x130   : > { %v368_v16 = vpack.c.bf16 %v367_v15, %v367_v15 }
 0x132   : > { %594 = vrot.lane.b32.xlu1 %v368_v16, %s1945_s30  ;;  %484 = vrot.lane.b32.xlu0 %v368_v16, %s1946_s13  ;;  %s1957_s30 = smov 80   ;;  %s1958_s13 = smov 72  }
 0x134   : > { %1557 = vmatmul.mubr.msk.bf16.vlgmr.msra.gmra.mxu1 %vm371_vm3, %v368_v16 }
 0x135   : > { %1568 = vmatprep.mubr.msk.bf16.mxu1 %vm1944_vm0, %v1943_v0 }
 0x136   : > { %704 = vrot.lane.b32.xlu1 %v368_v16, %s1947_s15  ;;  %706 = vrot.lane.b32.xlu0 %v2150_v14, %s1947_s15  ;;  %s1959_s15 = smov 68  }
 0x13a   : > { %814 = vrot.lane.b32.xlu1 %v368_v16, %s1948_s16  ;;  %816 = vrot.lane.b32.xlu0 %v2150_v14, %s1948_s16  ;;  %s1960_s16 = smov 4  }
 0x13e   : > { %924 = vrot.lane.b32.xlu1 %v368_v16, %s1949_s17  ;;  %926 = vrot.lane.b32.xlu0 %v2150_v14, %s1949_s17  ;;  %s1961_s17 = smov 8  }
 0x142   : > { %1034 = vrot.lane.b32.xlu1 %v368_v16, %s1950_s10  ;;  %1036 = vrot.lane.b32.xlu0 %v2150_v14, %s1950_s10  ;;  %s1962_s10 = smov 12  }
 0x146   : > { %1144 = vrot.lane.b32.xlu1 %v368_v16, %s1951_s9  ;;  %1146 = vrot.lane.b32.xlu0 %v2150_v14, %s1951_s9  ;;  %s1963_s9 = smov 16  }
 0x14a   : > { %432 = vrot.lane.b32.xlu1 %v2150_v14, %s1952_s11  ;;  %544 = vrot.lane.b32.xlu0 %v2150_v14, %s1953_s8  ;;  %s1964_s11 = smov 20   ;;  %s1965_s8 = smov 24  }
 0x1a0   : > { %v597_v17 = vpop.permute.xlu1 %596  ;;  %v487_v18 = vpop.permute.xlu0 %486 }
 0x1a1   : > { %v492_v19 = vsel %vm371_vm3, %v487_v18, 0  ;;  %v602_v23 = vsel %vm371_vm3, %v597_v17, 0 }
 0x1a2   : > { %1567 = vmatpush3.bf16.xpose.msra.mxu1 %v492_v19 }
 0x1a3   : > { %1578 = vmatprep.subr.bf16.mxu1 %v1943_v0 }
 0x1a4   : > { %v595_v20 = vpop.permute.xlu1 %594  ;;  %v485_v21 = vpop.permute.xlu0 %484 }
 0x1a8   : > { %v705_v22 = vpop.permute.xlu1 %704  ;;  %v707_v25 = vpop.permute.xlu0 %706 }
 0x1a9   : > { %1569 = vmatmul.mubr.msk.bf16.vlgmr.msra.gmra.mxu1 %vm371_vm3, %v485_v21  ;;  %v712_v27 = vsel %vm371_vm3, %v707_v25, 0 }
 0x1aa   : > { %1579 = vmatpush3.bf16.xpose.msra.mxu1 %v602_v23  ;;  %1580 = vmatprep.mubr.msk.bf16.mxu1 %vm1944_vm0, %v1943_v0 }
 0x1ab   : > { %1590 = vmatprep.subr.bf16.mxu1 %v1943_v0 }
 0x1ac   : > { %v815_v24 = vpop.permute.xlu1 %814  ;;  %v817_v29 = vpop.permute.xlu0 %816 }
 0x1ad   : > { %v822_v31 = vsel %vm371_vm3, %v817_v29, 0 }
 0x1b0   : > { %v925_v26 = vpop.permute.xlu1 %924  ;;  %v927_v34 = vpop.permute.xlu0 %926 }
 0x1b1   : > { %1581 = vmatmul.mubr.msk.bf16.vlgmr.msra.gmra.mxu1 %vm371_vm3, %v595_v20  ;;  %v932_v35 = vsel %vm371_vm3, %v927_v34, 0 }
 0x1b2   : > { %1591 = vmatpush3.bf16.xpose.msra.mxu1 %v712_v27  ;;  %1592 = vmatprep.mubr.msk.bf16.mxu1 %vm1944_vm0, %v1943_v0 }
 0x1b3   : > { %1602 = vmatprep.subr.bf16.mxu1 %v1943_v0 }
 0x1b4   : > { %v1035_v28 = vpop.permute.xlu1 %1034  ;;  %v1037_v36 = vpop.permute.xlu0 %1036 }
 0x1b5   : > { %v1042_v37 = vsel %vm371_vm3, %v1037_v36, 0 }
 0x1b8   : > { %v1145_v30 = vpop.permute.xlu1 %1144  ;;  %v1147_v38 = vpop.permute.xlu0 %1146 }
 0x1b9   : > { %1593 = vmatmul.mubr.msk.bf16.vlgmr.msra.gmra.mxu1 %vm371_vm3, %v705_v22  ;;  %v1152_v39 = vsel %vm371_vm3, %v1147_v38, 0 }
 0x1ba   : > { %1603 = vmatpush3.bf16.xpose.msra.mxu1 %v822_v31  ;;  %1604 = vmatprep.mubr.msk.bf16.mxu1 %vm1944_vm0, %v1943_v0 }
 0x1bb   : > { %1614 = vmatprep.subr.bf16.mxu1 %v1943_v0 }
 0x1bc   : > { %v433_v32 = vpop.permute.xlu1 %432  ;;  %v545_v1 = vpop.permute.xlu0 %544 }
 0x1bd   : > { %v439_v33 = vsel %vm437_vm4, %v433_v32, 0  ;;  %v550_v25 = vsel %vm437_vm4, %v545_v1, 0 }
 0x1be   : > { %1561 = vmatpush3.bf16.msra.mxu0 %v439_v33 }
 0x1bf   : > { %1572 = vmatprep.subr.bf16.mxu0 %v1943_v0 }
 0x1c1   : > { %1605 = vmatmul.mubr.msk.bf16.vlgmr.msra.gmra.mxu1 %vm371_vm3, %v815_v24 }
 0x1c2   : > { %1615 = vmatpush3.bf16.xpose.msra.mxu1 %v932_v35  ;;  %1616 = vmatprep.mubr.msk.bf16.mxu1 %vm1944_vm0, %v1943_v0 }
 0x1c3   : > { %1626 = vmatprep.subr.bf16.mxu1 %v1943_v0 }
 0x1c9   : > { %1617 = vmatmul.mubr.msk.bf16.vlgmr.msra.gmra.mxu1 %vm371_vm3, %v925_v26 }
 0x1ca   : > { %1627 = vmatpush3.bf16.xpose.msra.mxu1 %v1042_v37  ;;  %1628 = vmatprep.mubr.msk.bf16.mxu1 %vm1944_vm0, %v1943_v0 }
 0x1cb   : > { %1638 = vmatprep.subr.bf16.mxu1 %v1943_v0 }
 0x1d1   : > { %1629 = vmatmul.mubr.msk.bf16.vlgmr.msra.gmra.mxu1 %vm371_vm3, %v1035_v28 }
 0x1d2   : > { %1639 = vmatpush3.bf16.xpose.msra.mxu1 %v1152_v39  ;;  %1640 = vmatprep.mubr.msk.bf16.mxu1 %vm1944_vm0, %v1943_v0 }
 0x1d3   : > { %1650 = vmatprep.subr.bf16.mxu1 %v1943_v0 }
 0x1d9   : > { %1641 = vmatmul.mubr.msk.bf16.vlgmr.msra.gmra.mxu1 %vm371_vm3, %v1145_v30 }
 0x1da   : > { %1654 = vmatprep.mubr.msk.bf16.mxu1 %vm1944_vm0, %v1943_v0 }
 0x1f4   : > { %v412_v42 = vpop.f32.mrf.mxu1 }
 0x1f5   : > { %v413_v43 = vadd.f32 %v412_v42, %v2205_v41 }
 0x1f6   : > { %v1558_v44 = vpop.f32.mrf.mxu1 }
 0x1f7   : > { %v419_v45 = vsel %vm418_vm5, %v413_v43, -inf }
 0x1f8   : > { %420 = vmax.xlane.f32.xlu0 %v419_v45  ;;  %v415_v46 = vpop.f32.mrf.mxu1 }
 0x1fa   : > { %v1559_v47 = vpop.f32.mrf.mxu1 }
 0x20e   : > { %654 = vrot.lane.b32.xlu0 %v2150_v14, %s1954_s21 }
 0x269   : > { %v528_v48 = vpop.f32.mrf.mxu1 }
 0x26a   : > { %v2211_v49 = vadd.f32 %v528_v48, %v2205_v41 }
 0x26b   : > { %v1570_v50 = vpop.f32.mrf.mxu1 }
 0x26c   : > { %v534_v51 = vsel %vm418_vm5, %v2211_v49, -inf }
 0x26d   : > { %535 = vmax.xlane.f32.xlu1 %v534_v51  ;;  %v531_v52 = vpop.f32.mrf.mxu1 }
 0x26f   : > { %v1571_v53 = vpop.f32.mrf.mxu1 }
 0x271   : > { %v638_v54 = vpop.f32.mrf.mxu1 }
 0x272   : > { %v2216_v55 = vadd.f32 %v638_v54, %v2205_v41 }
 0x273   : > { %v1582_v56 = vpop.f32.mrf.mxu1 }
 0x274   : > { %v644_v57 = vsel %vm418_vm5, %v2216_v55, -inf }
 0x275   : > { %645 = vmax.xlane.f32.xlu0 %v644_v57  ;;  %v641_v58 = vpop.f32.mrf.mxu1 }
 0x277   : > { %v1583_v59 = vpop.f32.mrf.mxu1 }
 0x279   : > { %v748_v60 = vpop.f32.mrf.mxu1 }
 0x27a   : > { %v2221_v61 = vadd.f32 %v748_v60, %v2205_v41 }
 0x27b   : > { %v1594_v62 = vpop.f32.mrf.mxu1 }
 0x27c   : > { %v754_v63 = vsel %vm418_vm5, %v2221_v61, -inf }
 0x27d   : > { %755 = vmax.xlane.f32.xlu0 %v754_v63  ;;  %v751_v2 = vpop.f32.mrf.mxu1 }
 0x27e   : > { %764 = vrot.lane.b32.xlu1 %v2150_v14, %s1955_s22  ;;  %s1505_s22 = sshll.u32 %s2027_s3, 7  ;;  %s1366_s3 = scalar_lea.sflag [#allocation7], %s2124_s18 }
 0x27f   : > { %v1595_v3 = vpop.f32.mrf.mxu1 }
 0x281   : > { %v421_v4 = vpop.xlane.xlu0 %420  ;;  %v858_v5 = vpop.f32.mrf.mxu1 }
 0x282   : > { %v422_v6 = vsub.f32 %v413_v43, %v421_v4  ;;  %v2227_v7 = vadd.f32 %v858_v5, %v2205_v41 }
 0x283   : > { %v1606_v8 = vpop.f32.mrf.mxu1 }
 0x284   : > { %v423_v9 = vmul.f32 1.442695, %v422_v6  ;;  %v864_v10 = vsel %vm418_vm5, %v2227_v7, -inf }
 0x285   : > { %865 = vmax.xlane.f32.xlu0 %v864_v10  ;;  %v861_v11 = vpop.f32.mrf.mxu1  ;;  %v655_v38 = vpop.permute.xlu0 %654 }
 0x286   : > { %1756 = vpow2.f32 %v423_v9 }
 0x287   : > { %v1607_v12 = vpop.f32.mrf.mxu1 }
 0x289   : > { %v968_v13 = vpop.f32.mrf.mxu1 }
 0x28a   : > { %v2251_v31 = vadd.f32 %v968_v13, %v2205_v41 }
 0x28b   : > { %v1618_v15 = vpop.f32.mrf.mxu1 }
 0x28c   : > { %v974_v34 = vsel %vm418_vm5, %v2251_v31, -inf }
 0x28d   : > { %v971_v16 = vpop.f32.mrf.mxu1 }
 0x28f   : > { %v1619_v17 = vpop.f32.mrf.mxu1 }
 0x291   : > { %v1078_v18 = vpop.f32.mrf.mxu1 }
 0x292   : > { %v2232_v19 = vadd.f32 %v1078_v18, %v2205_v41 }
 0x293   : > { %v2234_v20 = vpop.eup %1756  ;;  %v1630_v21 = vpop.f32.mrf.mxu1 }
 0x294   : > { %v1084_v22 = vsel %vm418_vm5, %v2232_v19, -inf  ;;  %v428_v23 = vpack.c.bf16 %v2234_v20, %v2234_v20  ;;  %v425_v15 = vsel %vm418_vm5, %v2234_v20, 0.0 }
 0x295   : > { %1085 = vmax.xlane.f32.xlu0 %v1084_v22  ;;  %v1081_v24 = vpop.f32.mrf.mxu1 }
 0x296   : > { %1563 = vmatmul.mubr.msk.bf16.vlgmr.msra.gmra.mxu0 %vm418_vm5, %v428_v23 }
 0x297   : > { %1573 = vmatpush3.bf16.msra.mxu0 %v550_v25  ;;  %v1631_v26 = vpop.f32.mrf.mxu1  ;;  %1574 = vmatprep.mubr.msk.bf16.mxu0 %vm1944_vm0, %v1943_v0 }
 0x298   : > { %1584 = vmatprep.subr.bf16.mxu0 %v1943_v0 }
 0x299   : > { %v1188_v27 = vpop.f32.mrf.mxu1 }
 0x29a   : > { %v2246_v28 = vadd.f32 %v1188_v27, %v2205_v41 }
 0x29b   : > { %v1642_v29 = vpop.f32.mrf.mxu1 }
 0x29c   : > { %v1194_v30 = vsel %vm418_vm5, %v2246_v28, -inf }
 0x29d   : > { %1195 = vmax.xlane.f32.xlu0 %v1194_v30  ;;  %v1191_v32 = vpop.f32.mrf.mxu1 }
 0x29f   : > { %v1643_v33 = vpop.f32.mrf.mxu1 }
 0x2a2   : > { %975 = vmax.xlane.f32.xlu1 %v974_v34 }
 0x2b3   : > { %984 = vrot.lane.b32.xlu1 %v2150_v14, %s1956_s28  ;;  %874 = vrot.lane.b32.xlu0 %v2150_v14, %s1957_s30  ;;  %s296_s28 = scalar_lea.vmem [#allocation11], %s1476_s19  ;;  %s1967_s19 = smov [#allocation11]  }
 0x2b4   : > { %s1379_s30 = sshll.u32 %s296_s28, 4  ;;  %s2323_s30 = int_to_ptr.vmem [resolvable:$true] %s1379_s30 }
 0x2b7   : > { %1094 = vrot.lane.b32.xlu1 %v2150_v14, %s1958_s13 }
 0x2bb   : > { %1204 = vrot.lane.b32.xlu1 %v2150_v14, %s1959_s15  ;;  %v660_v14 = vsel %vm437_vm4, %v655_v38, 0 }
 0x2f6   : > { %v536_v35 = vpop.xlane.xlu1 %535 }
 0x2f7   : > { %v537_v36 = vsub.f32 %v2211_v49, %v536_v35 }
 0x2f9   : > { %v538_v37 = vmul.f32 1.442695, %v537_v36 }
 0x2fa   : > { %v765_v51 = vpop.permute.xlu1 %764 }
 0x2fb   : > { %1758 = vpow2.f32 %v538_v37 }
 0x2fe   : > { %v646_v39 = vpop.xlane.xlu0 %645 }
 0x2ff   : > { %v647_v40 = vsub.f32 %v2216_v55, %v646_v39  ;;  %v770_v55 = vsel %vm437_vm4, %v765_v51, 0 }
 0x301   : > { %v648_v41 = vmul.f32 1.442695, %v647_v40 }
 0x303   : > { %1760 = vpow2.f32 %v648_v41 }
 0x306   : > { %v756_v42 = vpop.xlane.xlu0 %755 }
 0x307   : > { %v757_v43 = vsub.f32 %v2221_v61, %v756_v42 }
 0x308   : > { %v1759_v44 = vpop.eup %1758 }
 0x309   : > { %v758_v45 = vmul.f32 1.442695, %v757_v43  ;;  %v540_v46 = vsel %vm418_vm5, %v1759_v44, 0.0  ;;  %v543_v47 = vpack.c.bf16 %v1759_v44, %v1759_v44 }
 0x30a   : > { %541 = vadd.xlane.f32.xlu1 %v540_v46 }
 0x30b   : > { %1762 = vpow2.f32 %v758_v45  ;;  %1575 = vmatmul.mubr.msk.bf16.vlgmr.msra.gmra.mxu0 %vm418_vm5, %v543_v47 }
 0x30c   : > { %1585 = vmatpush3.bf16.msra.mxu0 %v660_v14  ;;  %1586 = vmatprep.mubr.msk.bf16.mxu0 %vm1944_vm0, %v1943_v0 }
 0x30d   : > { %1596 = vmatprep.subr.bf16.mxu0 %v1943_v0 }
 0x30e   : > { %v866_v48 = vpop.xlane.xlu0 %865 }
 0x30f   : > { %v867_v49 = vsub.f32 %v2227_v7, %v866_v48 }
 0x310   : > { %v1761_v50 = vpop.eup %1760 }
 0x311   : > { %v868_v52 = vmul.f32 1.442695, %v867_v49  ;;  %v650_v53 = vsel %vm418_vm5, %v1761_v50, 0.0  ;;  %v653_v54 = vpack.c.bf16 %v1761_v50, %v1761_v50 }
 0x312   : > { %651 = vadd.xlane.f32.xlu0 %v650_v53 }
 0x313   : > { %1764 = vpow2.f32 %v868_v52  ;;  %1587 = vmatmul.mubr.msk.bf16.vlgmr.msra.gmra.mxu0 %vm418_vm5, %v653_v54 }
 0x314   : > { %1597 = vmatpush3.bf16.msra.mxu0 %v770_v55  ;;  %1598 = vmatprep.mubr.msk.bf16.mxu0 %vm1944_vm0, %v1943_v0 }
 0x315   : > { %1608 = vmatprep.subr.bf16.mxu0 %v1943_v0 }
 0x318   : > { %v1763_v56 = vpop.eup %1762 }
 0x319   : > { %v760_v57 = vsel %vm418_vm5, %v1763_v56, 0.0  ;;  %v763_v58 = vpack.c.bf16 %v1763_v56, %v1763_v56 }
 0x31a   : > { %761 = vadd.xlane.f32.xlu1 %v760_v57 }
 0x31b   : > { %1599 = vmatmul.mubr.msk.bf16.vlgmr.msra.gmra.mxu0 %vm418_vm5, %v763_v58 }
 0x31c   : > { %1610 = vmatprep.mubr.msk.bf16.mxu0 %vm1944_vm0, %v1943_v0 }
 0x31e   : > { %v1086_v59 = vpop.xlane.xlu0 %1085 }
 0x31f   : > { %v1087_v60 = vsub.f32 %v2232_v19, %v1086_v59 }
 0x320   : > { %v1765_v61 = vpop.eup %1764 }
 0x321   : > { %v1088_v62 = vmul.f32 1.442695, %v1087_v60  ;;  %v870_v63 = vsel %vm418_vm5, %v1765_v61, 0.0  ;;  %v873_v7 = vpack.c.bf16 %v1765_v61, %v1765_v61 }
 0x322   : > { %871 = vadd.xlane.f32.xlu0 %v870_v63 }
 0x323   : > { %1766 = vpow2.f32 %v1088_v62 }
 0x326   : > { %v1196_v1 = vpop.xlane.xlu0 %1195 }
 0x327   : > { %v1197_v2 = vsub.f32 %v2246_v28, %v1196_v1 }
 0x329   : > { %v1198_v8 = vmul.f32 1.442695, %v1197_v2 }
 0x32a   : > { %v875_v3 = vpop.permute.xlu0 %874 }
 0x32b   : > { %v880_v4 = vsel %vm437_vm4, %v875_v3, 0  ;;  %v976_v5 = vpop.xlane.xlu1 %975 }
 0x32c   : > { %v977_v6 = vsub.f32 %v2251_v31, %v976_v5  ;;  %1609 = vmatpush3.bf16.msra.mxu0 %v880_v4 }
 0x32d   : > { %1620 = vmatprep.subr.bf16.mxu0 %v1943_v0 }
 0x32e   : > { %v978_v9 = vmul.f32 1.442695, %v977_v6 }
 0x32f   : > { %v985_v10 = vpop.permute.xlu1 %984  ;;  %1611 = vmatmul.mubr.msk.bf16.vlgmr.msra.gmra.mxu0 %vm418_vm5, %v873_v7  ;;  %v1754_v7 = vld [vmem:[#allocation10 + $0x8] sm:$0xff]  }
 0x330   : > { %v1767_v11 = vpop.eup %1766  ;;  %1768 = vpow2.f32 %v978_v9  ;;  %v990_v12 = vsel %vm437_vm4, %v985_v10, 0  ;;  %1622 = vmatprep.mubr.msk.bf16.mxu0 %vm1944_vm0, %v1943_v0  ;;  %1651 = vmatpush3.bf16.msra.mxu1 %v1754_v7  ;;  %v1755_v9 = vld [vmem:[#allocation10] sm:$0xff]  }
 0x331   : > { %1621 = vmatpush3.bf16.msra.mxu0 %v990_v12  ;;  %v1090_v13 = vsel %vm418_vm5, %v1767_v11, 0.0  ;;  %1770 = vpow2.f32 %v1198_v8  ;;  %v1093_v24 = vpack.c.bf16 %v1767_v11, %v1767_v11  ;;  %1652 = vmatprep.subr.bf16.mxu1 %v1943_v0 }
 0x332   : > { %1091 = vadd.xlane.f32.xlu0 %v1090_v13  ;;  %1632 = vmatprep.subr.bf16.mxu0 %v1943_v0 }
 0x333   : > { %v1095_v17 = vpop.permute.xlu1 %1094 }
 0x334   : > { %v1100_v22 = vsel %vm437_vm4, %v1095_v17, 0  ;;  %1653 = vmatpush3.bf16.msra.mxu1 %v1755_v9 }
 0x336   : > { %426 = vadd.xlane.f32.xlu0 %v425_v15 }
 0x337   : > { %v1205_v20 = vpop.permute.xlu1 %1204 }
 0x338   : > { %v1210_v25 = vsel %vm437_vm4, %v1205_v20, 0 }
 0x33d   : > { %v1769_v16 = vpop.eup %1768 }
 0x33e   : > { %v980_v18 = vsel %vm418_vm5, %v1769_v16, 0.0  ;;  %v983_v19 = vpack.c.bf16 %v1769_v16, %v1769_v16  ;;  %v1771_v21 = vpop.eup %1770 }
 0x33f   : > { %981 = vadd.xlane.f32.xlu1 %v980_v18  ;;  %v1200_v23 = vsel %vm418_vm5, %v1771_v21, 0.0  ;;  %v1203_v26 = vpack.c.bf16 %v1771_v21, %v1771_v21 }
 0x340   : > { %1623 = vmatmul.mubr.msk.bf16.vlgmr.msra.gmra.mxu0 %vm418_vm5, %v983_v19 }
 0x341   : > { %1633 = vmatpush3.bf16.msra.mxu0 %v1100_v22  ;;  %1634 = vmatprep.mubr.msk.bf16.mxu0 %vm1944_vm0, %v1943_v0 }
 0x342   : > { %1644 = vmatprep.subr.bf16.mxu0 %v1943_v0 }
 0x343   : > { %1201 = vadd.xlane.f32.xlu1 %v1200_v23 }
 0x348   : > { %1635 = vmatmul.mubr.msk.bf16.vlgmr.msra.gmra.mxu0 %vm418_vm5, %v1093_v24 }
 0x349   : > { %1645 = vmatpush3.bf16.msra.mxu0 %v1210_v25  ;;  %1646 = vmatprep.mubr.msk.bf16.mxu0 %vm1944_vm0, %v1943_v0 }
 0x350   : > { %1647 = vmatmul.mubr.msk.bf16.vlgmr.msra.gmra.mxu0 %vm418_vm5, %v1203_v26 }
 0x356   : > { %v2305_v27 = vpop.f32.mrf.mxu0 }
 0x358   : > { %v1564_v28 = vpop.f32.mrf.mxu0 }
 0x35a   : > { %v478_v29 = vpop.f32.mrf.mxu0 }
 0x35c   : > { %v1565_v30 = vpop.f32.mrf.mxu0 }
 0x393   : > { %v542_v31 = vpop.xlane.xlu1 %541 }
 0x394   : > { %1772 = vrcp.f32 %v542_v31 }
 0x39b   : > { %v652_v32 = vpop.xlane.xlu0 %651 }
 0x39c   : > { %1774 = vrcp.f32 %v652_v32 }
 0x3a1   : > { %v1773_v33 = vpop.eup %1772 }
 0x3a3   : > { %v762_v34 = vpop.xlane.xlu1 %761 }
 0x3a4   : > { %1776 = vrcp.f32 %v762_v34 }
 0x3a9   : > { %v1775_v40 = vpop.eup %1774 }
 0x3ab   : > { %v872_v49 = vpop.xlane.xlu0 %871 }
 0x3ac   : > { %1778 = vrcp.f32 %v872_v49 }
 0x3b1   : > { %v1777_v46 = vpop.eup %1776 }
 0x3b9   : > { %v1779_v52 = vpop.eup %1778 }
 0x3bb   : > { %v1092_v59 = vpop.xlane.xlu0 %1091 }
 0x3bf   : > { %v427_v19 = vpop.xlane.xlu0 %426 }
 0x3c8   : > { %v982_v54 = vpop.xlane.xlu1 %981 }
 0x3c9   : > { %1780 = vrcp.f32 %v982_v54 }
 0x3ca   : > { %1782 = vrcp.f32 %v1092_v59 }
 0x3cb   : > { %v586_v35 = vpop.f32.mrf.mxu0 }
 0x3cc   : > { %v593_v36 = vmul.f32 %v1773_v33, %v586_v35  ;;  %v1202_v61 = vpop.xlane.xlu1 %1201 }
 0x3cd   : > { %v1576_v37 = vpop.f32.mrf.mxu0  ;;  %1784 = vrcp.f32 %v1202_v61 }
 0x3ce   : > { %1255 = vrot.lane.b32.xlu1 %v593_v36, %s1960_s16  ;;  %1786 = vrcp.f32 %v427_v19  ;;  %v1500_v37 = vld [vmem:[%s2370_s5] ss:$0 sm:$0xff]  ;;  %s2321_s16 = scalar_lea.hbm %s2371_s6, %s1505_s22 }
 0x3cf   : > { %v589_v38 = vpop.f32.mrf.mxu0 }
 0x3d1   : > { %v1577_v39 = vpop.f32.mrf.mxu0 }
 0x3d3   : > { %v696_v41 = vpop.f32.mrf.mxu0 }
 0x3d4   : > { %v703_v42 = vmul.f32 %v1775_v40, %v696_v41 }
 0x3d5   : > { %v1588_v43 = vpop.f32.mrf.mxu0 }
 0x3d6   : > { %1259 = vrot.lane.b32.xlu0 %v703_v42, %s1961_s17  ;;  %v1781_v60 = vpop.eup %1780  ;;  %s1868_s17 = scalar_lea.vmem %s2323_s30, 128 }
 0x3d7   : > { %v699_v44 = vpop.f32.mrf.mxu0  ;;  %v1783_v4 = vpop.eup %1782  ;;  %p1869_p11 = scmp.ne.s32.totalorder %s2323_s30, %s1868_s17 }
 0x3d9   : > { %v1589_v45 = vpop.f32.mrf.mxu0  ;;  %p1870_p1 = pnand %p1869_p11, %p2387_p0 }
 0x3da   : > { %v1785_v12 = vpop.eup %1784 }
 0x3db   : > { %v806_v47 = vpop.f32.mrf.mxu0  ;;  %v1787_v23 = vpop.eup %1786  ;;  %p1871_p2 = pneg %p1870_p1 }
 0x3dc   : > { %v813_v14 = vmul.f32 %v1777_v46, %v806_v47  ;;  %v482_v24 = vmul.f32 %v1787_v23, %v2305_v27 }
 0x3dd   : > { %v1600_v48 = vpop.f32.mrf.mxu0 }
 0x3de   : > { %1263 = vrot.lane.b32.xlu1 %v813_v14, %s1962_s10  ;;  %s1872_s10 = sshll.u32 %s1967_s19, 4  ;;  %s1873_s10 = int_to_ptr.vmem [resolvable:$false] %s1872_s10 }
 0x3df   : > { %v809_v50 = vpop.f32.mrf.mxu0  ;;  %p1875_p6 = scmp.lt.s32.totalorder %s2323_s30, %s1873_s10 }
 0x3e1   : > { %v1601_v51 = vpop.f32.mrf.mxu0 }
 0x3ef   : > { %v916_v53 = vpop.f32.mrf.mxu0 }
 0x3f0   : > { %v923_v55 = vmul.f32 %v1779_v52, %v916_v53 }
 0x3f1   : > { %v1612_v56 = vpop.f32.mrf.mxu0 }
 0x3f2   : > { %1267 = vrot.lane.b32.xlu1 %v923_v55, %s1963_s9  ;;  %s1874_s9 = scalar_lea.vmem %s1873_s10, 256 }
 0x3f3   : > { %v919_v57 = vpop.f32.mrf.mxu0  ;;  %p1876_p12 = scmp.lt.s32.totalorder %s1874_s9, %s1868_s17 }
 0x3f5   : > { %v1613_v58 = vpop.f32.mrf.mxu0  ;;  %p1877_p7 = por %p1876_p12, %p1875_p6 }
 0x3f7   : > { %p1878_p9 = pnand %p1877_p7, %p1871_p2 }
 0x400   : > { %v1026_v62 = vpop.f32.mrf.mxu0 }
 0x401   : > { %v1033_v63 = vmul.f32 %v1781_v60, %v1026_v62 }
 0x402   : > { %v1624_v1 = vpop.f32.mrf.mxu0 }
 0x403   : > { %1271 = vrot.lane.b32.xlu0 %v1033_v63, %s1964_s11 }
 0x404   : > { %v1029_v2 = vpop.f32.mrf.mxu0 }
 0x406   : > { %v1625_v3 = vpop.f32.mrf.mxu0 }
 0x408   : > { %v1136_v5 = vpop.f32.mrf.mxu0 }
 0x409   : > { %v1143_v6 = vmul.f32 %v1783_v4, %v1136_v5 }
 0x40a   : > { %v1636_v8 = vpop.f32.mrf.mxu0 }
 0x40b   : > { %1275 = vrot.lane.b32.xlu1 %v1143_v6, %s1965_s8 }
 0x40c   : > { %v1139_v10 = vpop.f32.mrf.mxu0 }
 0x40e   : > { %v1637_v11 = vpop.f32.mrf.mxu0 }
 0x410   : > { %v1246_v13 = vpop.f32.mrf.mxu0 }
 0x411   : > { %v1253_v15 = vmul.f32 %v1785_v12, %v1246_v13 }
 0x412   : > { %v1648_v16 = vpop.f32.mrf.mxu0 }
 0x413   : > { %1279 = vrot.lane.b32.xlu0 %v1253_v15, %s1966_s12 }
 0x414   : > { %v1249_v17 = vpop.f32.mrf.mxu0 }
 0x416   : > { %v1649_v18 = vpop.f32.mrf.mxu0 }
 0x440   : > { %v1256_v21 = vpop.permute.xlu1 %1255 }
 0x441   : > { %v1282_v0 = vsel %vm371_vm3, %v482_v24, %v1256_v21 }
 0x448   : > { %v1260_v20 = vpop.permute.xlu0 %1259 }
 0x449   : > { %v1283_v26 = vsel %vm418_vm5, %v1282_v0, %v1260_v20 }
 0x450   : > { %v1264_v22 = vpop.permute.xlu1 %1263 }
 0x451   : > { %v1285_v29 = vsel %vm1284_vm6, %v1283_v26, %v1264_v22 }
 0x464   : > { %v1268_v25 = vpop.permute.xlu1 %1267 }
 0x465   : > { %v1287_v31 = vsel %vm1286_vm7, %v1285_v29, %v1268_v25 }
 0x475   : > { %v1272_v28 = vpop.permute.xlu0 %1271 }
 0x476   : > { %v1289_v32 = vsel %vm1288_vm8, %v1287_v31, %v1272_v28 }
 0x47d   : > { %v1276_v30 = vpop.permute.xlu1 %1275 }
 0x47e   : > { %v1291_v33 = vsel %vm1290_vm9, %v1289_v32, %v1276_v30 }
 0x485   : > { %v1280_v34 = vpop.permute.xlu0 %1279 }
 0x486   : > { %v1293_v27 = vsel %vm1292_vm10, %v1291_v33, %v1280_v34 }
 0x487   : > { %v1294_v35 = vpack.c.bf16 %v1293_v27, %v1293_v27 }
 0x489   : > { %1296 = vst.msk [vmem:[#allocation3] sm:$0xf] %vm1295_vm11, %v1294_v35 }
 0x490   : > { %v1297_v36 = vld [vmem:[#allocation3] sm:$0xf] }
 0x491   : > { %1655 = vmatmul.mubr.msk.bf16.vlgmr.msra.gmra.mxu1 %vm316_vm1, %v1297_v36 }
 0x551   : > { %v1358_v38 = vpop.f32.mrf.mxu1 }
 0x552   : > { %v1359_v39 = vadd.f32 %v1500_v37, %v1358_v38 }
 0x553   : > { %v1656_v40 = vpop.f32.mrf.mxu1 }
 0x554   : > { %1364 = vst.msk [vmem:[%s296_s28] sm:$0xff] %vm316_vm1, %v1359_v39 }
 0x555   : > { %v1361_v41 = vpop.f32.mrf.mxu1 }
 0x556   : > { %1881 = shalt.err (!%p1878_p9)
}
 0x557   : > { %s1882_s11 = scalar_lea.hbm %s2321_s16, 128  ;;  %s1886_s12 = scalar_lea.hbm %s2371_s6, 256 }
 0x558   : > { %p1883_p13 = scmp.ne.s32.totalorder %s2321_s16, %s1882_s11  ;;  %p1887_p4 = scmp.lt.s32.totalorder %s2321_s16, %s2371_s6 }
 0x559   : > { %p1888_p8 = scmp.lt.s32.totalorder %s1886_s12, %s1882_s11 }
 0x55a   : > { %p1884_p5 = pnand %p1883_p13, %p2387_p0 }
 0x55b   : > { %p1889_p3 = por %p1888_p8, %p1887_p4 }
 0x55c   : > { %p1885_p10 = pneg %p1884_p5 }
 0x55e   : > { %p1890_p11 = pnand %p1889_p3, %p1885_p10 }
 0x560   : > { %1893 = shalt.err (!%p1890_p11)
}
 0x561   : > { %1668 = dma.vmem_to_hbm [thread:$0]  (%p2387_p0), %s2323_s30, 128, %s2321_s16, %s1366_s3   ;;  %v1657_v42 = vpop.f32.mrf.mxu1 }
 0x562 PF: > { %s1391_s22 = sand.u32 1, %s1924_s23   ;;  %p2388_p1 = scmp.ne.s32.totalorder %s2377_s29, 0 }
 0x563   : > { %p2389_p2 = scmp.ge.s32.totalorder %s1936_s26, 2  ;;  %s1392_s28 = scalar_lea.sflag [#allocation7], %s1391_s22 }
 0x565   : > { %p1682_p6 = pnand %p2389_p2, %p2388_p1 }
 0x567   : > { %p1683_p12 = pneg %p1682_p6 }
 0x569   : > { %1919 = dma.done.wait (%p1683_p12), %s1392_s28, 128  }
 0x56a   : > { %1921 = vsyncadd (%p1683_p12), %s1392_s28, 4294967168  ;;  %p21_p7 = scmp.ge.s32.totalorder %s2078_s20, 4   ;;  %s2390_s23 = smov %s1928_s24 }
 0x56b   : > { %s2391_s24 = smov %s1932_s25  ;;  %s2392_s25 = smov %s2094_s7 }
 0x56c   : > { %s2393_s26 = smov %s2078_s20  ;;  %23 = sbr.rel (!%p21_p7) target bundleno = 8 (0x8), region = 97 }
 0x571   :  { %1397 = vsyncpa [#allocation6], 1 }
 0x572   :  { %1399 = vsyncpa [#allocation6 + $0x1], 1 }
 0x573   :  { %1400 = vsyncpa [#allocation9], 1 }
 0x574   :  { %1401 = vsyncpa [#allocation7], 1 }
 0x575   :  { %1403 = vsyncpa [#allocation7 + $0x1], 1 }

</bundles_post_ra>
